<compile_context>
chip_gen: v6e
topology: v6e:2x2x1
jax: 0.10.0
libtpu: 0.0.40
codegen_flags: <defaults>
</compile_context>

<pallas_src>
import functools

import jax
import jax.numpy as jnp
from jax.experimental import pallas as pl
from jax.experimental.pallas import tpu as pltpu


# ----------------------------- Pallas kernel ------------------------------- #
def _q_mlp_kernel(s_ref, a_ref, w1s_ref, w1a_ref, w2_ref, pk_ref, out_ref):
    """Fused Q-MLP over one batch tile.

    s_ref  : (TB, state_dim)        f32
    a_ref  : (TB, action_dim + 1)   f32
    w1s_ref: (state_dim, H1)        bf16   (W1 rows for the state part)
    w1a_ref: (action_dim + 1, H1)   bf16   (W1 rows for the action part)
    w2_ref : (H1, H2)               bf16
    pk_ref : (1, H1 + H2 + H2 + 1)  f32    packed [b1 | b2 | wq_row | bq]
    out_ref: (TB, 1)                f32
    """
    h1 = w1s_ref.shape[1]
    h2 = w2_ref.shape[1]

    pk = pk_ref[...]                               # (1, P) — single tiny vreg load
    b1 = pk[:, :h1]                                # (1, H1)
    b2 = pk[:, h1:h1 + h2]                         # (1, H2)
    wq = pk[:, h1 + h2:h1 + 2 * h2]                # (1, H2)  == Wq.T
    bq = pk[:, h1 + 2 * h2:h1 + 2 * h2 + 1]        # (1, 1)

    # --- hidden layer 1 (concat fused as a split matmul), bf16 MXU, f32 acc ---
    h = jnp.dot(s_ref[...].astype(jnp.bfloat16), w1s_ref[...],
                preferred_element_type=jnp.float32)
    h = h + jnp.dot(a_ref[...].astype(jnp.bfloat16), w1a_ref[...],
                    preferred_element_type=jnp.float32)
    h = jnp.maximum(h + b1, 0.0)                   # f32 epilogue (VPU), v5e-safe

    # --- hidden layer 2 ---
    h = jnp.dot(h.astype(jnp.bfloat16), w2_ref[...],
                preferred_element_type=jnp.float32)
    h = jnp.maximum(h + b2, 0.0)

    # --- Q head (out_features = 1): VPU multiply + lane reduction, keeps the MXU
    #     free instead of burning a 1/128-or-1/256-utilization matmul pass ---
    q = jnp.sum(h * wq, axis=-1, keepdims=True) + bq
    out_ref[...] = q.astype(out_ref.dtype)


# ------------------------------- wrapper ----------------------------------- #
def _round_up(x, m):
    return ((x + m - 1) // m) * m


def q_function_z_forward(state, action, params, *, batch_tile=512):
    """JAX wrapper reproducing Q_Function_Z_NN.forward(state, action).

    state  : (B, state_dim) f32
    action : (B, action_dim + 1) f32  (action already concatenated with z by caller)
    params : dict with f32 master params w1 (in,out), b1 (1,H1), w2, b2, wq (H2,1), bq (1,1)
    """
    state = jnp.asarray(state, jnp.float32)
    action = jnp.asarray(action, jnp.float32)
    B, state_dim = state.shape
    a_dim = action.shape[1]

    w1, b1 = params["w1"], params["b1"]
    w2, b2 = params["w2"], params["b2"]
    wq, bq = params["wq"], params["bq"]
    h1 = w1.shape[1]
    h2 = w2.shape[1]

    # Fuse the torch.cat into the kernel: concat(state, action) @ W1
    #   == state @ W1[:state_dim] + action @ W1[state_dim:]
    w1s = w1[:state_dim].astype(jnp.bfloat16)
    w1a = w1[state_dim:].astype(jnp.bfloat16)
    w2b = w2.astype(jnp.bfloat16)

    # Pack all tiny epilogue params into one array: [b1 | b2 | wq_row | bq]
    packed = jnp.concatenate([b1, b2, wq.reshape(1, h2), bq], axis=1)   # (1, P) f32
    p_len = h1 + 2 * h2 + 1

    # --- batch tiling (keeps per-step VMEM < 1 MiB even double-buffered; sized
    #     against v7x's 64 MiB VMEM, trivially fine on v5e/v6e) ---
    if B <= batch_tile:
        tb = _round_up(max(B, 1), 8)       # sublane-aligned single tile
        padded_b = tb
    else:
        tb = batch_tile
        padded_b = _round_up(B, tb)
    if padded_b != B:
        pad = padded_b - B
        state = jnp.pad(state, ((0, pad), (0, 0)))
        action = jnp.pad(action, ((0, pad), (0, 0)))
    grid = (padded_b // tb,)

    out = pl.pallas_call(
        _q_mlp_kernel,
        out_shape=jax.ShapeDtypeStruct((padded_b, 1), jnp.float32),
        grid=grid,
        in_specs=[
            pl.BlockSpec((tb, state_dim), lambda i: (i, 0)),     # state tile (pipelined)
            pl.BlockSpec((tb, a_dim), lambda i: (i, 0)),         # action tile (pipelined)
            pl.BlockSpec((state_dim, h1), lambda i: (0, 0)),     # weights: VMEM-resident
            pl.BlockSpec((a_dim, h1), lambda i: (0, 0)),
            pl.BlockSpec((h1, h2), lambda i: (0, 0)),
            pl.BlockSpec((1, p_len), lambda i: (0, 0)),          # packed b1|b2|wq|bq
        ],
        out_specs=pl.BlockSpec((tb, 1), lambda i: (i, 0)),
        compiler_params=pltpu.CompilerParams(
            dimension_semantics=("parallel",),   # batch tiles shard across v7x's 2 TCs
        ),
    )(state, action, w1s, w1a, w2b, packed)
    return out[:B]


# ------------------------- deterministic parameters ------------------------ #
def xavier_uniform(key, fan_in, fan_out, gain=1.0):
    """torch.nn.init.xavier_uniform_ equivalent; returned as (in, out)."""
    bound = gain * jnp.sqrt(6.0 / (fan_in + fan_out))
    return jax.random.uniform(
        key, (fan_in, fan_out), minval=-bound, maxval=bound, dtype=jnp.float32
    )


def init_params(key, input_dim, hidden_layer_dim):
    """weight_initializer='xavier', bias_initializer='zero' (f32 master copy)."""
    params = {}
    dims = [input_dim] + list(hidden_layer_dim)
    keys = jax.random.split(key, len(hidden_layer_dim) + 1)
    params["w1"] = xavier_uniform(keys[0], dims[0], dims[1])
    params["b1"] = jnp.zeros((1, dims[1]), dtype=jnp.float32)
    params["w2"] = xavier_uniform(keys[1], dims[1], dims[2])
    params["b2"] = jnp.zeros((1, dims[2]), dtype=jnp.float32)
    params["wq"] = xavier_uniform(keys[2], dims[2], 1)
    params["bq"] = jnp.zeros((1, 1), dtype=jnp.float32)
    return params


# ---------------------------- references (pure JAX) ------------------------- #
def q_function_z_ref_f32(state, action, params):
    """Exact f32 semantics of the PyTorch module."""
    x = jnp.concatenate([state, action], axis=1)
    h = jnp.maximum(x @ params["w1"] + params["b1"], 0.0)
    h = jnp.maximum(h @ params["w2"] + params["b2"], 0.0)
    return h @ params["wq"] + params["bq"]


def q_function_z_ref_bf16(state, action, params):
    """Reference that mirrors the kernel's bf16-operand / f32-accumulate path."""
    state_dim = state.shape[1]
    h = jnp.dot(state.astype(jnp.bfloat16),
                params["w1"][:state_dim].astype(jnp.bfloat16),
                preferred_element_type=jnp.float32)
    h = h + jnp.dot(action.astype(jnp.bfloat16),
                    params["w1"][state_dim:].astype(jnp.bfloat16),
                    preferred_element_type=jnp.float32)
    h = jnp.maximum(h + params["b1"], 0.0)
    h = jnp.dot(h.astype(jnp.bfloat16), params["w2"].astype(jnp.bfloat16),
                preferred_element_type=jnp.float32)
    h = jnp.maximum(h + params["b2"], 0.0)
    return jnp.sum(h * params["wq"].reshape(1, -1), axis=-1, keepdims=True) + params["bq"]


# ----------------------------------- main ----------------------------------- #
if __name__ == "__main__":
    # nn_params-like configuration (small, consistent with the module):
    state_dim = 8
    action_dim = 7
    input_dim = state_dim + action_dim + 1          # layer_input_dim in __init__
    hidden_layer_dim = [32, 32]
    batch = 8

    key = jax.random.PRNGKey(0)
    k_param, k_state, k_action = jax.random.split(key, 3)

    params = init_params(k_param, input_dim, hidden_layer_dim)

    state = jax.random.normal(k_state, (batch, state_dim), dtype=jnp.float32)
    # action passed to forward carries the extra "+1" (z) feature:
    action = jax.random.normal(k_action, (batch, action_dim + 1), dtype=jnp.float32)

    fwd = jax.jit(q_function_z_forward)
    q_kernel = jax.block_until_ready(fwd(state, action, params))

    q_ref_bf16 = jax.block_until_ready(q_function_z_ref_bf16(state, action, params))
    q_ref_f32 = jax.block_until_ready(q_function_z_ref_f32(state, action, params))

    assert q_kernel.shape == (batch, 1)
    # Tight check vs the dtype-matched reference (same bf16-operand math path):
    assert jnp.allclose(q_kernel, q_ref_bf16, atol=1e-3, rtol=1e-3), (
        f"bf16-path mismatch:\n{q_kernel}\nvs\n{q_ref_bf16}"
    )
    # Loose check vs exact f32 module semantics (bf16 operand drift only):
    assert jnp.allclose(q_kernel, q_ref_f32, atol=5e-2, rtol=5e-2), (
        f"f32-semantics mismatch:\n{q_kernel}\nvs\n{q_ref_f32}"
    )
    print("KERNEL_OK")
</pallas_src>

<mosaic_0001>
module attributes {stable_mosaic.version = 11 : i64} {
  func.func @_q_mlp_kernel(%arg0: i32, %arg1: memref<8x8xf32, #tpu.memory_space<vmem>>, %arg2: memref<8x8xf32, #tpu.memory_space<vmem>>, %arg3: memref<8x32xbf16, #tpu.memory_space<vmem>>, %arg4: memref<8x32xbf16, #tpu.memory_space<vmem>>, %arg5: memref<32x32xbf16, #tpu.memory_space<vmem>>, %arg6: memref<1x97xf32, #tpu.memory_space<vmem>>, %arg7: memref<8x1xf32, #tpu.memory_space<vmem>>) attributes {dimension_semantics = [#tpu.dimension_semantics<parallel>], iteration_bounds = array<i64: 1>, scalar_prefetch = 0 : i64, scratch_operands = 0 : i64, tpu.core_type = #tpu.core_type<tc>, window_params = [{transform_indices = @transform_0, window_bounds = array<i64: 8, 8>}, {transform_indices = @transform_1, window_bounds = array<i64: 8, 8>}, {pipeline_mode = #tpu.pipeline_mode<synchronous>, transform_indices = @transform_2, window_bounds = array<i64: 8, 32>}, {pipeline_mode = #tpu.pipeline_mode<synchronous>, transform_indices = @transform_3, window_bounds = array<i64: 8, 32>}, {pipeline_mode = #tpu.pipeline_mode<synchronous>, transform_indices = @transform_4, window_bounds = array<i64: 32, 32>}, {pipeline_mode = #tpu.pipeline_mode<synchronous>, transform_indices = @transform_5, window_bounds = array<i64: 1, 97>}, {transform_indices = @transform_6, window_bounds = array<i64: 8, 1>}]} {
    %c0 = arith.constant 0 : index
    %c0_0 = arith.constant 0 : index
    %0 = vector.load %arg6[%c0, %c0_0] : memref<1x97xf32, #tpu.memory_space<vmem>>, vector<1x97xf32>
    %1 = vector.extract_strided_slice %0 {offsets = [0, 0], sizes = [1, 32], strides = [1, 1]} : vector<1x97xf32> to vector<1x32xf32>
    %2 = vector.extract_strided_slice %0 {offsets = [0, 32], sizes = [1, 32], strides = [1, 1]} : vector<1x97xf32> to vector<1x32xf32>
    %3 = vector.extract_strided_slice %0 {offsets = [0, 64], sizes = [1, 32], strides = [1, 1]} : vector<1x97xf32> to vector<1x32xf32>
    %4 = vector.extract_strided_slice %0 {offsets = [0, 96], sizes = [1, 1], strides = [1, 1]} : vector<1x97xf32> to vector<1x1xf32>
    %c0_1 = arith.constant 0 : index
    %c0_2 = arith.constant 0 : index
    %5 = vector.load %arg1[%c0_1, %c0_2] : memref<8x8xf32, #tpu.memory_space<vmem>>, vector<8x8xf32>
    %6 = arith.truncf %5 : vector<8x8xf32> to vector<8x8xbf16>
    %c0_3 = arith.constant 0 : index
    %c0_4 = arith.constant 0 : index
    %7 = vector.load %arg3[%c0_3, %c0_4] : memref<8x32xbf16, #tpu.memory_space<vmem>>, vector<8x32xbf16>
    %cst = arith.constant dense<0.000000e+00> : vector<8x32xf32>
    %8 = tpu.matmul %6, %7, %cst {dimension_numbers = #tpu.dot_dimension_numbers<[1], [0], [0], [1], [0, 0, 1, 1], [], []>} : vector<8x8xbf16>, vector<8x32xbf16>, vector<8x32xf32> -> vector<8x32xf32>
    %c0_5 = arith.constant 0 : index
    %c0_6 = arith.constant 0 : index
    %9 = vector.load %arg2[%c0_5, %c0_6] : memref<8x8xf32, #tpu.memory_space<vmem>>, vector<8x8xf32>
    %10 = arith.truncf %9 : vector<8x8xf32> to vector<8x8xbf16>
    %c0_7 = arith.constant 0 : index
    %c0_8 = arith.constant 0 : index
    %11 = vector.load %arg4[%c0_7, %c0_8] : memref<8x32xbf16, #tpu.memory_space<vmem>>, vector<8x32xbf16>
    %cst_9 = arith.constant dense<0.000000e+00> : vector<8x32xf32>
    %12 = tpu.matmul %10, %11, %cst_9 {dimension_numbers = #tpu.dot_dimension_numbers<[1], [0], [0], [1], [0, 0, 1, 1], [], []>} : vector<8x8xbf16>, vector<8x32xbf16>, vector<8x32xf32> -> vector<8x32xf32>
    %13 = arith.addf %8, %12 : vector<8x32xf32>
    %14 = vector.broadcast %1 : vector<1x32xf32> to vector<8x32xf32>
    %15 = arith.addf %13, %14 : vector<8x32xf32>
    %cst_10 = arith.constant 0.000000e+00 : f32
    %16 = vector.broadcast %cst_10 : f32 to vector<8x32xf32>
    %17 = arith.maximumf %15, %16 : vector<8x32xf32>
    %18 = arith.truncf %17 : vector<8x32xf32> to vector<8x32xbf16>
    %c0_11 = arith.constant 0 : index
    %c0_12 = arith.constant 0 : index
    %19 = vector.load %arg5[%c0_11, %c0_12] : memref<32x32xbf16, #tpu.memory_space<vmem>>, vector<32x32xbf16>
    %cst_13 = arith.constant dense<0.000000e+00> : vector<8x32xf32>
    %20 = tpu.matmul %18, %19, %cst_13 {dimension_numbers = #tpu.dot_dimension_numbers<[1], [0], [0], [1], [0, 0, 1, 1], [], []>} : vector<8x32xbf16>, vector<32x32xbf16>, vector<8x32xf32> -> vector<8x32xf32>
    %21 = vector.broadcast %2 : vector<1x32xf32> to vector<8x32xf32>
    %22 = arith.addf %20, %21 : vector<8x32xf32>
    %cst_14 = arith.constant 0.000000e+00 : f32
    %23 = vector.broadcast %cst_14 : f32 to vector<8x32xf32>
    %24 = arith.maximumf %22, %23 : vector<8x32xf32>
    %25 = vector.broadcast %3 : vector<1x32xf32> to vector<8x32xf32>
    %26 = arith.mulf %24, %25 : vector<8x32xf32>
    %cst_15 = arith.constant dense<0.000000e+00> : vector<8xf32>
    %27 = vector.multi_reduction <add>, %26, %cst_15 [1] : vector<8x32xf32> to vector<8xf32>
    %28 = vector.shape_cast %27 : vector<8xf32> to vector<8x1xf32>
    %29 = vector.broadcast %4 : vector<1x1xf32> to vector<8x1xf32>
    %30 = arith.addf %28, %29 : vector<8x1xf32>
    %c0_16 = arith.constant 0 : index
    %c0_17 = arith.constant 0 : index
    %31 = vector.load %arg7[%c0_16, %c0_17] : memref<8x1xf32, #tpu.memory_space<vmem>>, vector<8x1xf32>
    tpu.vector_store %arg7[%c0_16, %c0_17], %30 {strides = array<i32>} : memref<8x1xf32, #tpu.memory_space<vmem>>, vector<8x1xf32>,
    return
  }
  func.func @transform_0(%arg0: i32) -> (i32, i32) {
    %c0_i32 = arith.constant 0 : i32
    %c0_i32_0 = arith.constant 0 : i32
    return %arg0, %c0_i32 : i32, i32
  }
  func.func @transform_1(%arg0: i32) -> (i32, i32) {
    %c0_i32 = arith.constant 0 : i32
    %c0_i32_0 = arith.constant 0 : i32
    return %arg0, %c0_i32 : i32, i32
  }
  func.func @transform_2(%arg0: i32) -> (i32, i32) {
    %c0_i32 = arith.constant 0 : i32
    %c0_i32_0 = arith.constant 0 : i32
    %c0_i32_1 = arith.constant 0 : i32
    return %c0_i32, %c0_i32_0 : i32, i32
  }
  func.func @transform_3(%arg0: i32) -> (i32, i32) {
    %c0_i32 = arith.constant 0 : i32
    %c0_i32_0 = arith.constant 0 : i32
    %c0_i32_1 = arith.constant 0 : i32
    return %c0_i32, %c0_i32_0 : i32, i32
  }
  func.func @transform_4(%arg0: i32) -> (i32, i32) {
    %c0_i32 = arith.constant 0 : i32
    %c0_i32_0 = arith.constant 0 : i32
    %c0_i32_1 = arith.constant 0 : i32
    return %c0_i32, %c0_i32_0 : i32, i32
  }
  func.func @transform_5(%arg0: i32) -> (i32, i32) {
    %c0_i32 = arith.constant 0 : i32
    %c0_i32_0 = arith.constant 0 : i32
    %c0_i32_1 = arith.constant 0 : i32
    return %c0_i32, %c0_i32_0 : i32, i32
  }
  func.func @transform_6(%arg0: i32) -> (i32, i32) {
    %c0_i32 = arith.constant 0 : i32
    %c0_i32_0 = arith.constant 0 : i32
    return %arg0, %c0_i32 : i32, i32
  }
}

</mosaic_0001>

<bundles_post_ra>
// kernel: q_function_z_forward.1
= control target key start
LH: loop header
LB: loop body
LE: loop exit
PB: predicated region body
PF: predicated region fallthrough
CT: control target
= control target key end

     0   :  { %vm35_vm0 = vcmask 1043456   ;;  %v256_v0 = vmov 0.0   ;;  %vm257_vm1 = vmmov 0   ;;  %vm31_vm2 = vcmask 64512   ;;  %s258_s7 = smov 96   ;;  %s259_s8 = smov 64   ;;  %s320_s3 = inlined_call_operand.vmem [shape: bf16[8,32], index: 3, kind: input, shape index: {}]   ;;  %s321_s2 = inlined_call_operand.vmem [shape: bf16[8,32], index: 2, kind: input, shape index: {}]   ;;  %s322_s1 = inlined_call_operand.vmem [shape: f32[8,8], index: 1, kind: input, shape index: {}]   ;;  %s323_s0 = inlined_call_operand.vmem [shape: f32[8,8], index: 0, kind: input, shape index: {}]   ;;  %s324_s4 = inlined_call_operand.vmem [shape: bf16[32,32], index: 4, kind: input, shape index: {}]   ;;  %s325_s5 = inlined_call_operand.vmem [shape: f32[1,97], index: 5, kind: input, shape index: {}]   ;;  %s326_s6 = inlined_call_operand.vmem [shape: f32[8,1], index: 6, kind: output, shape index: {}]  }
   0x1   :  { %229 = vmatprep.subr.bf16.mxu0 %v256_v0  ;;  %235 = vmatprep.subr.bf16.mxu1 %v256_v0  ;;  %v30_v1 = vld [vmem:[%s320_s3] sm:$0xf]  ;;  %v254_v9 = vld [vmem:[%s324_s4 + $0x8] sm:$0xff]   ;;  %vm153_vm3 = vcmask 261120   ;;  %vm210_vm4 = vcmask 7168  }
   0x2   :  { %v27_v2 = vld [vmem:[%s321_s2] sm:$0xf]  ;;  %v37_v4 = vsel %vm35_vm0, %v30_v1, 0  ;;  %231 = vmatprep.mubr.msk.bf16.mxu0 %vm257_vm1, %v256_v0  ;;  %237 = vmatprep.mubr.msk.bf16.mxu1 %vm257_vm1, %v256_v0 }
   0x3   :  { %v28_v3 = vld [vmem:[%s322_s1] sm:$0xff]  ;;  %v83_v5 = vsel %vm35_vm0, %v27_v2, 0  ;;  %230 = vmatpush3.bf16.msra.mxu0 %v37_v4 }
   0x4   :  { %v29_v6 = vpack.c.bf16 %v28_v3, %v28_v3  ;;  %v25_v7 = vld [vmem:[%s323_s0] sm:$0xff]  ;;  %236 = vmatpush3.bf16.msra.mxu1 %v83_v5  ;;  %241 = vmatprep.subr.bf16.mxu0 %v256_v0 }
   0x5   :  { %v26_v8 = vpack.c.bf16 %v25_v7, %v25_v7  ;;  %v255_v10 = vld [vmem:[%s324_s4] sm:$0xff]   ;;  %s260_s4 = smov 32  }
   0x6   :  { %232 = vmatmul.mubr.msk.bf16.vlgmr.msra.gmra.mxu0 %vm31_vm2, %v29_v6  ;;  %v218_v11 = vld [vmem:[%s325_s5] ss:$0 sm:$0xff] }
   0x7   :  { %238 = vmatmul.mubr.msk.bf16.vlgmr.msra.gmra.mxu1 %vm31_vm2, %v26_v8  ;;  %245 = vmatprep.mubr.msk.bf16.mxu0 %vm257_vm1, %v256_v0 }
   0x8   :  { %242 = vmatpush3.bf16.msra.mxu0 %v254_v9  ;;  %150 = vrot.lane.b32.xlu0 %v218_v11, %s258_s7 }
   0x9   :  { %243 = vmatprep.subr.bf16.mxu0 %v256_v0 }
   0xc   :  { %244 = vmatpush3.bf16.msra.mxu0 %v255_v10  ;;  %198 = vrot.lane.b32.xlu0 %v218_v11, %s259_s8 }
  0x7a   :  { %v151_v24 = vpop.permute.xlu0 %150 }
  0x7e   :  { %v199_v28 = vpop.permute.xlu0 %198 }
  0xc6   :  { %v73_v12 = vpop.f32.mrf.mxu0 }
  0xc7   :  { %v119_v13 = vpop.f32.mrf.mxu1 }
  0xc8   :  { %v120_v14 = vadd.f32 %v119_v13, %v73_v12  ;;  %v233_v15 = vpop.f32.mrf.mxu0 }
  0xc9   :  { %v239_v16 = vpop.f32.mrf.mxu1 }
  0xca   :  { %v131_v17 = vadd.f32 %v218_v11, %v120_v14  ;;  %v76_v18 = vpop.f32.mrf.mxu0 }
  0xcb   :  { %v122_v19 = vpop.f32.mrf.mxu1 }
  0xcc   :  { %v132_v20 = vmax.f32 %v131_v17, 0.0  ;;  %v234_v21 = vpop.f32.mrf.mxu0 }
  0xcd   :  { %v240_v22 = vpop.f32.mrf.mxu1 }
  0xce   :  { %v133_v23 = vpack.c.bf16 %v132_v20, %v132_v20 }
  0xd0   :  { %246 = vmatmul.mubr.msk.bf16.vlgmr.msra.gmra.mxu0 %vm153_vm3, %v133_v23 }
 0x190   :  { %v191_v25 = vpop.f32.mrf.mxu0 }
 0x191   :  { %v192_v26 = vadd.f32 %v191_v25, %v151_v24 }
 0x192   :  { %v247_v27 = vpop.f32.mrf.mxu0 }
 0x193   :  { %v197_v29 = vmax.f32 %v192_v26, 0.0 }
 0x194   :  { %v194_v30 = vpop.f32.mrf.mxu0 }
 0x195   :  { %v201_v31 = vmul.f32 %v199_v28, %v197_v29 }
 0x196   :  { %v248_v32 = vpop.f32.mrf.mxu0 }
 0x197   :  { %v202_v33 = vsel %vm153_vm3, %v201_v31, 0.0 }
 0x198   :  { %203 = vadd.xlane.f32.xlu1 %v202_v33 }
 0x221   :  { %v204_v34 = vpop.xlane.xlu1 %203 }
 0x222   :  { %v205_v35 = vadd.f32 %v218_v11, %v204_v34 }
 0x224   :  { %207 = vrot.lane.b32.xlu1 %v205_v35, %s260_s4 }
 0x296   :  { %v208_v36 = vpop.permute.xlu1 %207 }
 0x297   :  { %211 = vst.msk [vmem:[%s326_s6] sm:$0xff] %vm210_vm4, %v208_v36 }

</bundles_post_ra>
